<compile_context>
chip_gen: v7x
topology: tpu7x:2x2x1
jax: 0.10.0
libtpu: 0.0.40
codegen_flags: <defaults>
</compile_context>

<pallas_src>
import jax
import jax.numpy as jnp
from jax import lax
from jax.experimental import pallas as pl
from jax.experimental.pallas import tpu as pltpu


LN_EPS = 1e-5  # nn.LayerNorm default


def _round_up(x, m):
    return ((x + m - 1) // m) * m


def _residual_ln_kernel(x_ref, r_ref, g_ref, b_ref, o_ref):
    # x_ref, r_ref, o_ref: (TILE_ROWS, D)      g_ref, b_ref: (1, D) float32
    s = x_ref[...].astype(jnp.float32) + r_ref[...].astype(jnp.float32)

    # Two-pass statistics: mean, then centered sum-of-squares.  Extra XLU/VPU
    # work is hidden under DMA; avoids E[x^2]-mean^2 cancellation.
    inv_d = 1.0 / float(s.shape[-1])
    mean = jnp.sum(s, axis=-1, keepdims=True) * inv_d
    c = s - mean
    var = jnp.sum(c * c, axis=-1, keepdims=True) * inv_d
    inv = lax.rsqrt(var + LN_EPS)  # EUP slot — effectively free

    o_ref[...] = (c * inv * g_ref[...] + b_ref[...]).astype(o_ref.dtype)


def _vmem_capacity_bytes():
    try:
        return int(pltpu.get_tpu_info().vmem_capacity_bytes)
    except Exception:
        return 64 * 1024 * 1024  # conservative: v7x per-TC VMEM


def _num_tensorcores():
    """Best-effort TensorCore-per-chip count (2 on v7x, 1 on v5e/v6e)."""
    try:
        info = pltpu.get_tpu_info()
        for attr in ("num_tensorcores", "tensorcore_count", "num_cores",
                     "core_count"):
            v = getattr(info, attr, None)
            if isinstance(v, int) and v > 1:
                return v
    except Exception:
        pass
    return 1


def _per_row_vmem_bytes(d_model, in_itemsize, out_itemsize):
    # Steady-state live VMEM per tile row:
    #   x, residual : double-buffered input blocks   (2 arrays x 2 buffers)
    #   out         : double-buffered output block
    #   f32 temps   : `s` plus one more intermediate before the output cast
    io = d_model * (2 * 2 * in_itemsize + 2 * out_itemsize)
    tmp = d_model * 4 * 2
    return io + tmp


def _choose_tile_rows(n_rows, d_model, in_itemsize, out_itemsize, sublane):
    vmem_bytes = _vmem_capacity_bytes()
    row_bytes = _per_row_vmem_bytes(d_model, in_itemsize, out_itemsize)
    # Keep everything within ~half of physical VMEM (headroom for Mosaic
    # internal scratch), f32 temporaries included in the accounting.
    budget_rows = max(sublane, (vmem_bytes // 2) // row_bytes)
    # ~2 MiB per *input* block is already past the pipelining knee on every
    # generation (>= ~0.6 us of DMA/step at v7x's 3.2 TB/s vs ~0.35 us
    # per-step overhead; several us/step on v5e/v6e).  Bigger buys nothing.
    target_rows = max(sublane, (2 * 1024 * 1024) // max(1, d_model * in_itemsize))
    tile_rows = min(budget_rows, target_rows)
    # Don't over-allocate tiny problems.
    tile_rows = min(tile_rows, _round_up(n_rows, sublane))
    tile_rows = max(sublane, (tile_rows // sublane) * sublane)
    return int(tile_rows)


def residual_layer_norm(x, residual, gamma, beta, *, tile_rows=None,
                        vmem_limit_bytes=None):
    """Fused (x + residual) -> LayerNorm(d_model) -> (eval) dropout identity."""
    assert x.shape == residual.shape
    orig_shape = x.shape
    d_model = orig_shape[-1]
    out_dtype = x.dtype

    # Flatten leading dims to rows.  No padding, no post-slice: the kernel's
    # grid handles ragged row blocks and sub-128 feature widths directly.
    x2 = x.reshape(-1, d_model)
    r2 = residual.reshape(-1, d_model)
    n_rows = x2.shape[0]

    # gamma/beta: cast to f32 once on the host; resident across grid steps.
    g2 = gamma.reshape(1, d_model).astype(jnp.float32)
    b2 = beta.reshape(1, d_model).astype(jnp.float32)

    in_itemsize = jnp.dtype(x.dtype).itemsize
    out_itemsize = jnp.dtype(out_dtype).itemsize
    sublane = max(8, (8 * 4) // in_itemsize)  # 8 for f32, 16 for bf16

    if tile_rows is None:
        tile_rows = _choose_tile_rows(n_rows, d_model, in_itemsize,
                                      out_itemsize, sublane)
    tile_rows = max(sublane, (int(tile_rows) // sublane) * sublane)

    num_blocks = int(pl.cdiv(n_rows, tile_rows))

    if vmem_limit_bytes is None:
        needed = (tile_rows * _per_row_vmem_bytes(d_model, in_itemsize,
                                                  out_itemsize)
                  + 2 * 2 * _round_up(d_model, 128) * 4  # gamma/beta blocks
                  + (4 << 20))                           # Mosaic internal scratch
        vmem_limit_bytes = int(min(max(needed, 16 * 1024 * 1024),
                                   _vmem_capacity_bytes()))

    row_spec = pl.BlockSpec((tile_rows, d_model), lambda i: (i, 0))
    vec_spec = pl.BlockSpec((1, d_model), lambda i: (0, 0))

    def _call(dim_semantics):
        return pl.pallas_call(
            _residual_ln_kernel,
            out_shape=jax.ShapeDtypeStruct((n_rows, d_model), out_dtype),
            grid_spec=pltpu.PrefetchScalarGridSpec(
                num_scalar_prefetch=0,
                grid=(num_blocks,),
                in_specs=[row_spec, row_spec, vec_spec, vec_spec],
                out_specs=row_spec,
            ),
            compiler_params=pltpu.CompilerParams(
                dimension_semantics=dim_semantics,
                vmem_limit_bytes=vmem_limit_bytes,
            ),
        )(x2, r2, g2, b2)

    # v7x: 2 TensorCores/chip — shard the row grid across TCs so both cores
    # issue DMAs on this purely bandwidth-bound op.  Single-TC chips
    # (v5e/v6e) take the plain "parallel" path.
    if _num_tensorcores() > 1 and num_blocks > 1:
        try:
            out = _call((pltpu.CORE_PARALLEL,))
        except Exception:
            out = _call(("parallel",))
    else:
        out = _call(("parallel",))

    return out.reshape(orig_shape)


def _reference(x, residual, gamma, beta):
    s = (x + residual).astype(jnp.float32)
    mean = jnp.mean(s, axis=-1, keepdims=True)
    var = jnp.mean((s - mean) ** 2, axis=-1, keepdims=True)
    y = (s - mean) * lax.rsqrt(var + LN_EPS) * gamma.astype(jnp.float32) \
        + beta.astype(jnp.float32)
    return y.astype(x.dtype)


if __name__ == "__main__":
    key = jax.random.PRNGKey(0)

    # --- test 1: module-natural small shape (batch=2, seq=8, d_model=32) ---
    kx, kr, kg, kb = jax.random.split(key, 4)
    B, S, D = 2, 8, 32
    x = jax.random.normal(kx, (B, S, D), dtype=jnp.float32)
    residual = jax.random.normal(kr, (B, S, D), dtype=jnp.float32)
    # nn.LayerNorm(d_model) default init: weight = ones, bias = zeros
    gamma = jnp.ones((D,), dtype=jnp.float32)
    beta = jnp.zeros((D,), dtype=jnp.float32)

    out = jax.block_until_ready(residual_layer_norm(x, residual, gamma, beta))
    ref = _reference(x, residual, gamma, beta)
    assert out.shape == (B, S, D)
    assert jnp.allclose(out, ref, atol=1e-4, rtol=1e-4), "mismatch (test 1)"

    # --- test 2: non-(8,128)-aligned sizes, ragged last row-block, affine ---
    k1, k2, k3, k4 = jax.random.split(kg, 4)
    B2, S2, D2 = 3, 5, 96  # 15 rows (not a multiple of tile), D < 128
    x2 = jax.random.normal(k1, (B2, S2, D2), dtype=jnp.float32)
    r2 = jax.random.normal(k2, (B2, S2, D2), dtype=jnp.float32)
    g2 = 1.0 + 0.1 * jax.random.normal(k3, (D2,), dtype=jnp.float32)
    b2 = 0.1 * jax.random.normal(k4, (D2,), dtype=jnp.float32)

    out2 = jax.block_until_ready(
        residual_layer_norm(x2, r2, g2, b2, tile_rows=8))  # forces grid=2, ragged
    ref2 = _reference(x2, r2, g2, b2)
    assert out2.shape == (B2, S2, D2)
    assert jnp.allclose(out2, ref2, atol=1e-4, rtol=1e-4), "mismatch (test 2)"

    # --- test 3: bf16 I/O, ragged rows with bf16 sublane tiling ---
    k5, k6 = jax.random.split(kb, 2)
    B3, S3, D3 = 2, 9, 128  # 18 rows; tile_rows=16 -> grid=2, ragged
    x3 = jax.random.normal(k5, (B3, S3, D3), dtype=jnp.float32).astype(jnp.bfloat16)
    r3 = jax.random.normal(k6, (B3, S3, D3), dtype=jnp.float32).astype(jnp.bfloat16)
    g3 = jnp.ones((D3,), dtype=jnp.float32)
    b3 = jnp.zeros((D3,), dtype=jnp.float32)

    out3 = jax.block_until_ready(
        residual_layer_norm(x3, r3, g3, b3, tile_rows=16))
    ref3 = _reference(x3, r3, g3, b3)
    assert out3.shape == (B3, S3, D3)
    assert jnp.allclose(out3.astype(jnp.float32), ref3.astype(jnp.float32),
                        atol=5e-2, rtol=5e-2), "mismatch (test 3)"

    print("KERNEL_OK")
</pallas_src>

<mosaic_0001>
module attributes {stable_mosaic.version = 11 : i64} {
  func.func @_residual_ln_kernel(%arg0: i32, %arg1: memref<16x32xf32, #tpu.memory_space<vmem>>, %arg2: memref<16x32xf32, #tpu.memory_space<vmem>>, %arg3: memref<1x32xf32, #tpu.memory_space<vmem>>, %arg4: memref<1x32xf32, #tpu.memory_space<vmem>>, %arg5: memref<16x32xf32, #tpu.memory_space<vmem>>) attributes {dimension_semantics = [#tpu.dimension_semantics<parallel>], iteration_bounds = array<i64: 1>, scalar_prefetch = 0 : i64, scratch_operands = 0 : i64, tpu.core_type = #tpu.core_type<tc>, window_params = [{transform_indices = @transform_0, window_bounds = array<i64: 16, 32>}, {transform_indices = @transform_1, window_bounds = array<i64: 16, 32>}, {pipeline_mode = #tpu.pipeline_mode<synchronous>, transform_indices = @transform_2, window_bounds = array<i64: 1, 32>}, {pipeline_mode = #tpu.pipeline_mode<synchronous>, transform_indices = @transform_3, window_bounds = array<i64: 1, 32>}, {transform_indices = @transform_4, window_bounds = array<i64: 16, 32>}]} {
    %c0 = arith.constant 0 : index
    %c0_0 = arith.constant 0 : index
    %0 = vector.load %arg1[%c0, %c0_0] : memref<16x32xf32, #tpu.memory_space<vmem>>, vector<16x32xf32>
    %c0_1 = arith.constant 0 : index
    %c0_2 = arith.constant 0 : index
    %1 = vector.load %arg2[%c0_1, %c0_2] : memref<16x32xf32, #tpu.memory_space<vmem>>, vector<16x32xf32>
    %2 = arith.addf %0, %1 : vector<16x32xf32>
    %cst = arith.constant dense<0.000000e+00> : vector<16xf32>
    %3 = vector.multi_reduction <add>, %2, %cst [1] : vector<16x32xf32> to vector<16xf32>
    %4 = vector.shape_cast %3 : vector<16xf32> to vector<16x1xf32>
    %cst_3 = arith.constant 3.125000e-02 : f32
    %5 = vector.broadcast %cst_3 : f32 to vector<16x1xf32>
    %6 = arith.mulf %4, %5 : vector<16x1xf32>
    %7 = vector.broadcast %6 : vector<16x1xf32> to vector<16x32xf32>
    %8 = arith.subf %2, %7 : vector<16x32xf32>
    %9 = arith.mulf %8, %8 : vector<16x32xf32>
    %cst_4 = arith.constant dense<0.000000e+00> : vector<16xf32>
    %10 = vector.multi_reduction <add>, %9, %cst_4 [1] : vector<16x32xf32> to vector<16xf32>
    %11 = vector.shape_cast %10 : vector<16xf32> to vector<16x1xf32>
    %cst_5 = arith.constant 3.125000e-02 : f32
    %12 = vector.broadcast %cst_5 : f32 to vector<16x1xf32>
    %13 = arith.mulf %11, %12 : vector<16x1xf32>
    %cst_6 = arith.constant 9.99999974E-6 : f32
    %14 = vector.broadcast %cst_6 : f32 to vector<16x1xf32>
    %15 = arith.addf %13, %14 : vector<16x1xf32>
    %16 = math.rsqrt %15 : vector<16x1xf32>
    %17 = vector.broadcast %16 : vector<16x1xf32> to vector<16x32xf32>
    %18 = arith.mulf %8, %17 : vector<16x32xf32>
    %c0_7 = arith.constant 0 : index
    %c0_8 = arith.constant 0 : index
    %19 = vector.load %arg3[%c0_7, %c0_8] : memref<1x32xf32, #tpu.memory_space<vmem>>, vector<1x32xf32>
    %20 = vector.broadcast %19 : vector<1x32xf32> to vector<16x32xf32>
    %21 = arith.mulf %18, %20 : vector<16x32xf32>
    %c0_9 = arith.constant 0 : index
    %c0_10 = arith.constant 0 : index
    %22 = vector.load %arg4[%c0_9, %c0_10] : memref<1x32xf32, #tpu.memory_space<vmem>>, vector<1x32xf32>
    %23 = vector.broadcast %22 : vector<1x32xf32> to vector<16x32xf32>
    %24 = arith.addf %21, %23 : vector<16x32xf32>
    %c0_11 = arith.constant 0 : index
    %c0_12 = arith.constant 0 : index
    %25 = vector.load %arg5[%c0_11, %c0_12] : memref<16x32xf32, #tpu.memory_space<vmem>>, vector<16x32xf32>
    tpu.vector_store %arg5[%c0_11, %c0_12], %24 {strides = array<i32>} : memref<16x32xf32, #tpu.memory_space<vmem>>, vector<16x32xf32>,
    return
  }
  func.func @transform_0(%arg0: i32) -> (i32, i32) {
    %c0_i32 = arith.constant 0 : i32
    %c0_i32_0 = arith.constant 0 : i32
    return %arg0, %c0_i32 : i32, i32
  }
  func.func @transform_1(%arg0: i32) -> (i32, i32) {
    %c0_i32 = arith.constant 0 : i32
    %c0_i32_0 = arith.constant 0 : i32
    return %arg0, %c0_i32 : i32, i32
  }
  func.func @transform_2(%arg0: i32) -> (i32, i32) {
    %c0_i32 = arith.constant 0 : i32
    %c0_i32_0 = arith.constant 0 : i32
    %c0_i32_1 = arith.constant 0 : i32
    return %c0_i32, %c0_i32_0 : i32, i32
  }
  func.func @transform_3(%arg0: i32) -> (i32, i32) {
    %c0_i32 = arith.constant 0 : i32
    %c0_i32_0 = arith.constant 0 : i32
    %c0_i32_1 = arith.constant 0 : i32
    return %c0_i32, %c0_i32_0 : i32, i32
  }
  func.func @transform_4(%arg0: i32) -> (i32, i32) {
    %c0_i32 = arith.constant 0 : i32
    %c0_i32_0 = arith.constant 0 : i32
    return %arg0, %c0_i32 : i32, i32
  }
}

</mosaic_0001>

<bundles_post_ra>
// kernel: tpu_custom_call.1
= control target key start
LH: loop header
LB: loop body
LE: loop exit
PB: predicated region body
PF: predicated region fallthrough
CT: control target
= control target key end

     0   :  { %9 = vsyncpa [#allocation3], 0  ;;  %s287_s0 = inlined_call_operand.hbm [shape: f32[16,32], index: 0, kind: input, shape index: {}]   ;;  %s288_s1 = inlined_call_operand.hbm [shape: f32[16,32], index: 1, kind: input, shape index: {}]   ;;  %s289_s2 = inlined_call_operand.vmem [shape: f32[1,32], index: 2, kind: input, shape index: {}]   ;;  %s290_s3 = inlined_call_operand.vmem [shape: f32[1,32], index: 3, kind: input, shape index: {}]   ;;  %s291_s4 = inlined_call_operand.hbm [shape: f32[16,32], index: 4, kind: output, shape index: {}]  }
   0x1   :  { %10 = vsyncpa [#allocation6], 0 }
   0x2   :  { %11 = vsyncpa [#allocation4], 0  ;;  %s200_s15 = smov [#allocation2]   ;;  %s128_s19 = scalar_lea.hbm %s287_s0, 256 }
   0x3   :  { %s17_s16 = sshll.u32 %s200_s15, 4  ;;  %p129_p0 = scmp.ne.s32.totalorder %s287_s0, %s128_s19  ;;  %s18_s16 = int_to_ptr.vmem [resolvable:$true] %s17_s16 }
   0x4   :  { %p132_p1 = scmp.lt.u32.totalorder %s128_s19, %s287_s0 }
   0x6   :  { %p134_p2 = pnand %p132_p1, %p129_p0 }
   0x8   :  { %137 = shalt.err (!%p134_p2)
}
   0x9   :  { %s138_s24 = scalar_lea.vmem %s18_s16, 256  ;;  %p143_p4 = scmp.lt.s32.totalorder %s18_s16, %s18_s16 }
   0xa   :  { %p139_p3 = scmp.ne.s32.totalorder %s18_s16, %s138_s24  ;;  %p144_p5 = scmp.lt.s32.totalorder %s138_s24, %s138_s24 }
   0xc   :  { %p145_p6 = por %p144_p5, %p143_p4 }
   0xe   :  { %p146_p7 = pnand %p145_p6, %p139_p3 }
  0x10   :  { %149 = shalt.err (!%p146_p7)
}
  0x11   :  { %s201_s25 = smov 128   ;;  %s202_s26 = smov 8  }
  0x12   :  { %23 = dma.hbm_to_vmem [thread:$0]  %s287_s0, 256, %s18_s16, [#allocation3], %s201_s25, %s201_s25, %s202_s26  }
  0x13   :  { %s203_s29 = smov [#allocation5]   ;;  %s150_s7 = scalar_lea.hbm %s288_s1, 256 }
  0x14   :  { %s29_s30 = sshll.u32 %s203_s29, 4  ;;  %p151_p8 = scmp.ne.s32.totalorder %s288_s1, %s150_s7  ;;  %s30_s30 = int_to_ptr.vmem [resolvable:$true] %s29_s30 }
  0x15   :  { %p154_p9 = scmp.lt.u32.totalorder %s150_s7, %s288_s1 }
  0x17   :  { %p156_p10 = pnand %p154_p9, %p151_p8 }
  0x19   :  { %159 = shalt.err (!%p156_p10)
}
  0x1a   :  { %s160_s12 = scalar_lea.vmem %s30_s30, 256  ;;  %p165_p12 = scmp.lt.s32.totalorder %s30_s30, %s30_s30 }
  0x1b   :  { %p161_p11 = scmp.ne.s32.totalorder %s30_s30, %s160_s12  ;;  %p166_p13 = scmp.lt.s32.totalorder %s160_s12, %s160_s12 }
  0x1d   :  { %p167_p0 = por %p166_p13, %p165_p12 }
  0x1f   :  { %p168_p1 = pnand %p167_p0, %p161_p11 }
  0x21   :  { %171 = shalt.err (!%p168_p1)
}
  0x22   :  { %35 = dma.hbm_to_vmem [thread:$0]  %s288_s1, 256, %s30_s30, [#allocation6], %s201_s25, %s201_s25, %s202_s26  }
  0x23   :  { %194 = dma.done.wait [#allocation3], 256  }
  0x24   :  { %195 = vsyncadd [#allocation3], 4294967040 }
  0x25   :  { %196 = dma.done.wait [#allocation6], 256  }
  0x26   :  { %197 = vsyncadd [#allocation6], 4294967040  ;;  %v46_v0 = vld [vmem:[#allocation2] sm:$0xff]  ;;  %v48_v1 = vld [vmem:[#allocation5] sm:$0xff]  ;;  %vm52_vm0 = vcmask 261120   ;;  %s204_s17 = smov [#allocation7]  }
  0x27   :  { %v47_v2 = vld [vmem:[#allocation2 + $0x8] sm:$0xff]  ;;  %v50_v3 = vadd.f32 %v48_v1, %v46_v0  ;;  %v49_v4 = vld [vmem:[#allocation5 + $0x8] sm:$0xff]  ;;  %v117_v25 = vld [vmem:[%s289_s2] ss:$0 sm:$0xff]  ;;  %s104_s18 = sshll.u32 %s204_s17, 4  ;;  %s105_s18 = int_to_ptr.vmem [resolvable:$true] %s104_s18 }
  0x28   :  { %v51_v5 = vadd.f32 %v49_v4, %v47_v2  ;;  %v118_v27 = vld [vmem:[%s290_s3] ss:$0 sm:$0xff]  ;;  %s172_s19 = scalar_lea.vmem %s105_s18, 256  ;;  %p177_p3 = scmp.lt.s32.totalorder %s105_s18, %s105_s18 }
  0x29   :  { %v53_v6 = vsel %vm52_vm0, %v50_v3, 0.0  ;;  %p173_p2 = scmp.ne.s32.totalorder %s105_s18, %s172_s19  ;;  %p178_p4 = scmp.lt.s32.totalorder %s172_s19, %s172_s19 }
  0x2a   :  { %54 = vadd.xlane.f32.xlu0 %v53_v6  ;;  %v56_v7 = vsel %vm52_vm0, %v51_v5, 0.0 }
  0x2b   :  { %p179_p5 = por %p178_p4, %p177_p3 }
  0x2d   :  { %p180_p6 = pnand %p179_p5, %p173_p2 }
  0x2e   :  { %57 = vadd.xlane.f32.xlu0 %v56_v7 }
  0xb7   :  { %v55_v8 = vpop.xlane.xlu0 %54 }
  0xb8   :  { %v59_v9 = vmul.f32 0.03125, %v55_v8 }
  0xba   :  { %v61_v10 = vsub.f32 %v50_v3, %v59_v9 }
  0xbb   :  { %v58_v11 = vpop.xlane.xlu0 %57 }
  0xbc   :  { %v60_v12 = vmul.f32 0.03125, %v58_v11  ;;  %v63_v13 = vmul.f32 %v61_v10, %v61_v10 }
  0xbe   :  { %v62_v14 = vsub.f32 %v51_v5, %v60_v12  ;;  %v65_v15 = vsel %vm52_vm0, %v63_v13, 0.0 }
  0xbf   :  { %66 = vadd.xlane.f32.xlu1 %v65_v15 }
  0xc0   :  { %v64_v16 = vmul.f32 %v62_v14, %v62_v14 }
  0xc2   :  { %v68_v17 = vsel %vm52_vm0, %v64_v16, 0.0 }
  0xc3   :  { %69 = vadd.xlane.f32.xlu1 %v68_v17 }
 0x14c   :  { %v67_v18 = vpop.xlane.xlu1 %66 }
 0x14d   :  { %v71_v19 = vmul.f32 0.03125, %v67_v18 }
 0x14f   :  { %v73_v20 = vadd.f32 1e-05, %v71_v19 }
 0x150   :  { %v70_v21 = vpop.xlane.xlu1 %69 }
 0x151   :  { %124 = vrsqrt.f32 %v73_v20  ;;  %v72_v22 = vmul.f32 0.03125, %v70_v21 }
 0x153   :  { %v74_v23 = vadd.f32 1e-05, %v72_v22 }
 0x155   :  { %126 = vrsqrt.f32 %v74_v23 }
 0x15b   :  { %v125_v24 = vpop.eup %124 }
 0x15c   :  { %v77_v26 = vmul.f32 %v125_v24, %v61_v10 }
 0x15e   :  { %v86_v28 = vmul.f32 %v117_v25, %v77_v26 }
 0x15f   :  { %v127_v29 = vpop.eup %126 }
 0x160   :  { %v78_v30 = vmul.f32 %v127_v29, %v62_v14  ;;  %v95_v31 = vadd.f32 %v118_v27, %v86_v28 }
 0x162   :  { %v87_v32 = vmul.f32 %v117_v25, %v78_v30  ;;  %97 = vst.msk [vmem:[#allocation7] sm:$0xff] %vm52_vm0, %v95_v31 }
 0x164   :  { %v96_v33 = vadd.f32 %v118_v27, %v87_v32 }
 0x166   :  { %98 = vst.msk [vmem:[#allocation7 + $0x8] sm:$0xff] %vm52_vm0, %v96_v33 }
 0x167   :  { %183 = shalt.err (!%p180_p6)
}
 0x168   :  { %s184_s20 = scalar_lea.hbm %s291_s4, 256 }
 0x169   :  { %p185_p7 = scmp.ne.s32.totalorder %s291_s4, %s184_s20  ;;  %p188_p8 = scmp.lt.u32.totalorder %s184_s20, %s291_s4 }
 0x16b   :  { %p190_p9 = pnand %p188_p8, %p185_p7 }
 0x16d   :  { %193 = shalt.err (!%p190_p9)
}
 0x16e   :  { %110 = dma.vmem_to_hbm [thread:$0]  %s105_s18, 256, %s291_s4, [#allocation4], %s201_s25, %s201_s25, %s202_s26  }
 0x16f   :  { %198 = dma.done.wait [#allocation4], 256  }
 0x170   :  { %199 = vsyncadd [#allocation4], 4294967040 }
 0x171   :  { %114 = vsyncpa [#allocation3], 1 }
 0x172   :  { %115 = vsyncpa [#allocation6], 1 }
 0x173   :  { %116 = vsyncpa [#allocation4], 1 }

</bundles_post_ra>
